<compile_context>
chip_gen: v6e
topology: v6e:2x2x1
jax: 0.10.0
libtpu: 0.0.40
codegen_flags: <defaults>
</compile_context>

<pallas_src>
import math
import functools

import numpy as np
import jax
import jax.numpy as jnp
from jax.experimental import pallas as pl
from jax.experimental.pallas import tpu as pltpu


def make_pe_table(max_seq_len: int, embed_dim: int) -> np.ndarray:
    """Deterministic sinusoidal table, bit-matching the PyTorch __init__ loop."""
    pe = np.zeros((max_seq_len, embed_dim), dtype=np.float32)
    for pos in range(max_seq_len):
        for i in range(0, embed_dim, 2):
            pe[pos, i] = math.sin(pos / 10000 ** (2 * i / embed_dim))
            pe[pos, i + 1] = math.cos(pos / 10000 ** (2 * (i + 1) / embed_dim))
    return pe


# ----------------------------- kernel --------------------------------------


def _pe_add_kernel(x_ref, pe_ref, o_ref, *, scale):
    # x_ref / o_ref / pe_ref: matching (TR, W) tiles (pe is f32).
    o_ref[...] = (x_ref[...].astype(jnp.float32) * scale
                  + pe_ref[...]).astype(o_ref.dtype)


# ----------------------------- wrapper --------------------------------------


def _pick_row_tile(rows: int, width: int, itemsize: int,
                   target_tile_bytes: int = 2 << 20):
    """Largest multiple-of-8 divisor of `rows` whose (tr, width) tile fits the
    budget; falls back to the smallest such divisor; None if none exists."""
    best = None
    smallest = None
    for tr in range(8, rows + 1, 8):
        if rows % tr:
            continue
        if smallest is None:
            smallest = tr
        if tr * width * itemsize <= target_tile_bytes:
            best = tr
    return best if best is not None else smallest


def positional_embedding(x: jax.Array, pe_table: jax.Array, embed_dim: int,
                         *, min_pallas_elems: int = 32768) -> jax.Array:
    """x: (B, S, D); pe_table: (max_seq_len, D) float32."""
    B, S, D = x.shape
    assert D == embed_dim
    scale = float(math.sqrt(embed_dim))
    pe_slice = pe_table[:S, :].astype(jnp.float32)  # static slice, plain JAX glue

    if x.size < min_pallas_elems:
        # Tiny problem: per-grid-step overhead dwarfs the work; let XLA fuse it.
        return (x.astype(jnp.float32) * scale
                + pe_slice[None, :, :]).astype(x.dtype)

    # --- lane packing: fold g consecutive positions into one lane-dense row ---
    g = 128 // math.gcd(D, 128)
    if g > 1 and (S % g != 0):
        g = 1
    S_p = S // g                      # packed rows per sequence
    W = g * D                         # packed row width (multiple of 128 when g>1)
    pe2 = pe_slice.reshape(S_p, W)

    itemsize = max(jnp.dtype(x.dtype).itemsize, 4)  # conservative (f32) budget
    tr = _pick_row_tile(S_p, W, itemsize)
    kernel = functools.partial(_pe_add_kernel, scale=scale)

    if tr is not None:
        # Main path: 2D (B*S_p, W) slab, row tiles; pe resident across batch.
        n_sb = S_p // tr
        x2 = x.reshape(B * S_p, W)
        out2 = pl.pallas_call(
            kernel,
            out_shape=jax.ShapeDtypeStruct((B * S_p, W), x.dtype),
            grid=(n_sb, B),           # seq-block OUTER, batch INNER
            in_specs=[
                pl.BlockSpec((tr, W), lambda sb, b: (b * n_sb + sb, 0)),
                # pe block index depends only on sb -> DMA'd once per sb,
                # stays VMEM-resident across the inner batch axis.
                pl.BlockSpec((tr, W), lambda sb, b: (sb, 0)),
            ],
            out_specs=pl.BlockSpec((tr, W), lambda sb, b: (b * n_sb + sb, 0)),
            compiler_params=pltpu.CompilerParams(
                dimension_semantics=("parallel", "parallel")),
        )(x2, pe2)
        return out2.reshape(B, S, D)

    # Fallback: one squeezed (S_p, W) block per batch element.  Block dims
    # equal the full trailing array dims, so the layout constraint always holds.
    x3 = x.reshape(B, S_p, W)
    out3 = pl.pallas_call(
        kernel,
        out_shape=jax.ShapeDtypeStruct((B, S_p, W), x.dtype),
        grid=(B,),
        in_specs=[
            pl.BlockSpec((None, S_p, W), lambda b: (b, 0, 0)),  # squeezed batch dim
            pl.BlockSpec((S_p, W), lambda b: (0, 0)),           # pe resident
        ],
        out_specs=pl.BlockSpec((None, S_p, W), lambda b: (b, 0, 0)),
        compiler_params=pltpu.CompilerParams(
            dimension_semantics=("parallel",)),
    )(x3, pe2)
    return out3.reshape(B, S, D)


if __name__ == "__main__":
    max_seq_len = 64
    embed_dim = 32
    batch = 2

    pe_np = make_pe_table(max_seq_len, embed_dim)
    pe_table = jnp.asarray(pe_np)
    key = jax.random.PRNGKey(0)

    # Test 1: module-sized shapes (batch=2, seq=8, hidden=32) -> fallback
    # (squeezed per-batch block), lane-dense via packing.
    seq_len = 8
    k1, k2 = jax.random.split(key)
    x1 = jax.random.normal(k1, (batch, seq_len, embed_dim), dtype=jnp.float32)
    out1 = positional_embedding(x1, pe_table, embed_dim, min_pallas_elems=0)
    out1 = jax.block_until_ready(out1)
    ref1 = x1 * math.sqrt(embed_dim) + pe_table[None, :seq_len, :]
    np.testing.assert_allclose(np.asarray(out1), np.asarray(ref1),
                               rtol=1e-6, atol=1e-6)

    # Test 2: slightly longer sequence -> main row-tiled path.
    seq_len2 = 64
    x2 = jax.random.normal(k2, (batch, seq_len2, embed_dim), dtype=jnp.float32)
    out2 = positional_embedding(x2, pe_table, embed_dim, min_pallas_elems=0)
    out2 = jax.block_until_ready(out2)
    ref2 = x2 * math.sqrt(embed_dim) + pe_table[None, :seq_len2, :]
    np.testing.assert_allclose(np.asarray(out2), np.asarray(ref2),
                               rtol=1e-6, atol=1e-6)

    print("KERNEL_OK")
</pallas_src>

<mosaic_0001>
module attributes {stable_mosaic.version = 11 : i64} {
  func.func @_pe_add_kernel(%arg0: i32, %arg1: memref<1x2x128xf32, #tpu.memory_space<vmem>>, %arg2: memref<2x128xf32, #tpu.memory_space<vmem>>, %arg3: memref<1x2x128xf32, #tpu.memory_space<vmem>>) attributes {dimension_semantics = [#tpu.dimension_semantics<parallel>], iteration_bounds = array<i64: 2>, scalar_prefetch = 0 : i64, scratch_operands = 0 : i64, tpu.core_type = #tpu.core_type<tc>, window_params = [{transform_indices = @transform_0, window_bounds = array<i64: 1, 2, 128>}, {pipeline_mode = #tpu.pipeline_mode<synchronous>, transform_indices = @transform_1, window_bounds = array<i64: 2, 128>}, {transform_indices = @transform_2, window_bounds = array<i64: 1, 2, 128>}]} {
    %c0 = arith.constant 0 : index
    %c0_0 = arith.constant 0 : index
    %c0_1 = arith.constant 0 : index
    %0 = vector.load %arg1[%c0, %c0_0, %c0_1] : memref<1x2x128xf32, #tpu.memory_space<vmem>>, vector<1x2x128xf32>
    %1 = vector.shape_cast %0 : vector<1x2x128xf32> to vector<2x128xf32>
    %cst = arith.constant 5.65685415 : f32
    %2 = vector.broadcast %cst : f32 to vector<2x128xf32>
    %3 = arith.mulf %1, %2 : vector<2x128xf32>
    %c0_2 = arith.constant 0 : index
    %c0_3 = arith.constant 0 : index
    %4 = vector.load %arg2[%c0_2, %c0_3] : memref<2x128xf32, #tpu.memory_space<vmem>>, vector<2x128xf32>
    %5 = arith.addf %3, %4 : vector<2x128xf32>
    %c0_4 = arith.constant 0 : index
    %c0_5 = arith.constant 0 : index
    %c0_6 = arith.constant 0 : index
    %6 = vector.load %arg3[%c0_4, %c0_5, %c0_6] : memref<1x2x128xf32, #tpu.memory_space<vmem>>, vector<1x2x128xf32>
    %7 = vector.shape_cast %6 : vector<1x2x128xf32> to vector<2x128xf32>
    %8 = vector.shape_cast %5 : vector<2x128xf32> to vector<1x2x128xf32>
    tpu.vector_store %arg3[%c0_4, %c0_5, %c0_6], %8 {strides = array<i32>} : memref<1x2x128xf32, #tpu.memory_space<vmem>>, vector<1x2x128xf32>,
    return
  }
  func.func @transform_0(%arg0: i32) -> (i32, i32, i32) {
    %c0_i32 = arith.constant 0 : i32
    %c0_i32_0 = arith.constant 0 : i32
    %c0_i32_1 = arith.constant 0 : i32
    return %arg0, %c0_i32, %c0_i32_0 : i32, i32, i32
  }
  func.func @transform_1(%arg0: i32) -> (i32, i32) {
    %c0_i32 = arith.constant 0 : i32
    %c0_i32_0 = arith.constant 0 : i32
    %c0_i32_1 = arith.constant 0 : i32
    return %c0_i32, %c0_i32_0 : i32, i32
  }
  func.func @transform_2(%arg0: i32) -> (i32, i32, i32) {
    %c0_i32 = arith.constant 0 : i32
    %c0_i32_0 = arith.constant 0 : i32
    %c0_i32_1 = arith.constant 0 : i32
    return %arg0, %c0_i32, %c0_i32_0 : i32, i32, i32
  }
}

</mosaic_0001>

<bundles_post_ra>
// kernel: tpu_custom_call.1
= control target key start
LH: loop header
LB: loop body
LE: loop exit
PB: predicated region body
PF: predicated region fallthrough
CT: control target
= control target key end

     0   :  { %7 = vsyncpa [#allocation3], 0  ;;  %s650_s0 = inlined_call_operand.hbm [shape: f32[2,2,128], index: 0, kind: input, shape index: {}]   ;;  %s651_s1 = inlined_call_operand.hbm [shape: f32[2,128], index: 1, kind: input, shape index: {}]   ;;  %s652_s2 = inlined_call_operand.hbm [shape: f32[2,2,128], index: 2, kind: output, shape index: {}]  }
   0x1   :  { %9 = vsyncpa [#allocation3 + $0x1], 0 }
   0x2   :  { %10 = vsyncpa [#allocation6], 0 }
   0x3   :  { %11 = vsyncpa [#allocation4], 0 }
   0x4   :  { %13 = vsyncpa [#allocation4 + $0x1], 0  ;;  %s484_s9 = smov 0   ;;  %s486_s10 = smov 0  }
   0x5   :  { %s488_s11 = smov 0   ;;  %s490_s12 = smov 0  }
   0x6 LB: > { %s505_s13 = sadd.s32 4294967295, %s464_s12   ;;  %s271_s14 = sadd.s32 4294967294, %s464_s12   ;;  %s464_s12 = sphi %s490_s12, %s675_s12   ;;  %s460_s11 = sphi %s488_s11, %s674_s11   ;;  %s456_s10 = sphi %s486_s10, %s673_s10   ;;  %s452_s9 = sphi %s484_s9, %s672_s9  }
   0x7   : > { %p39_p0 = scmp.ne.s32.totalorder %s456_s10, %s452_s9  ;;  %p653_p1 = scmp.eq.s32.totalorder %s505_s13, 0 }
   0x8   : > { %p90_p3 = scmp.eq.s32.totalorder %s271_s14, 1  ;;  %p272_p5 = scmp.ge.s32.totalorder %s464_s12, 1 }
   0x9   : > { %p514_p4 = por %p653_p1, %p39_p0  ;;  %p97_p7 = scmp.lt.s32.totalorder %s464_s12, 3 }
   0xa   : > { %p519_p6 = por %p90_p3, %p39_p0  ;;  %s466_s18 = smov [#allocation5]  }
   0xb   : > { %s657_s15 = scalar_select %p514_p4, 1, 0 }
   0xc   : > { %s658_s16 = scalar_select %p519_p6, 1, 0 }
   0xd   : > { %p524_p8 = pnand %p272_p5, %p97_p7  ;;  %s110_s19 = sshll.u32 %s466_s18, 4  ;;  %s111_s19 = int_to_ptr.vmem [resolvable:$true] %s110_s19 }
   0xe   : > { %s532_s20 = sadd.s32 1, %s464_s12   ;;  %s26_s24 = sadd.s32 1, %s460_s11 }
   0xf   : > { %s659_s17 = scalar_select %p524_p8, 1, 0 }
  0x10   : > { %p293_p10 = pneg %p524_p8  ;;  %s23_s22 = ssub.s32 %s464_s12, %s532_s20 }
  0x11   : > { %p542_p12 = scmp.eq.s32.totalorder %s23_s22, 0  ;;  %p33_p13 = scmp.ne.s32.totalorder %s460_s11, %s456_s10 }
  0x12   : > { %p536_p11 = pnand %p293_p10, %p653_p1  ;;  %s353_s25 = scalar_lea.vmem %s111_s19, 32 }
  0x13   : > { %p354_p3 = scmp.ne.s32.totalorder %s111_s19, %s353_s25  ;;  %p361_p9 = scmp.lt.s32.totalorder %s111_s19, %s111_s19 }
  0x14   : > { %p344_p0 = pneg %p536_p11  ;;  %p362_p2 = scmp.lt.s32.totalorder %s353_s25, %s353_s25 }
  0x16   : > { %p356_p5 = pnand %p354_p3, %p344_p0  ;;  %p363_p10 = por %p362_p2, %p361_p9 }
  0x18   : > { %p357_p7 = pneg %p356_p5 }
  0x1a   : > { %p364_p1 = pnand %p363_p10, %p357_p7 }
  0x1c   : > { %367 = shalt.err (!%p364_p1)
}
  0x1d   : > { %296 = dma.hbm_to_vmem [thread:$0]  (!%p536_p11), %s651_s1, 32, %s111_s19, [#allocation6]  }
  0x1e   : > { %s559_s28 = scalar_select %p542_p12, %s460_s11, %s26_s24  }
  0x1f   : > { %p34_p1 = scmp.eq.s32.totalorder %s464_s12, 0  ;;  %p662_p2 = scmp.eq.s32.totalorder %s505_s13, 1 }
  0x20   : > { %p306_p0 = scmp.lt.s32.totalorder %s464_s12, 2  ;;  %s121_s30 = sand.u32 1, %s460_s11  }
  0x21   : > { %p567_p9 = por %p662_p2, %p33_p13  ;;  %p35_p3 = por %p34_p1, %p33_p13 }
  0x22   : > { %s275_s3 = sshll.u32 %s121_s30, 1  ;;  %s276_s4 = sshll.u32 %s464_s12, 5 }
  0x23   : > { %s663_s29 = scalar_select %p567_p9, 1, 0 }
  0x24   : > { %s580_s7 = scalar_lea.hbm %s650_s0, %s276_s4  ;;  %s125_s8 = scalar_lea.vmem [#allocation2], %s275_s3 }
  0x25   : > { %s132_s14 = sshll.u32 %s125_s8, 4  ;;  %p582_p11 = pnand %p306_p0, %p35_p3  ;;  %s133_s14 = int_to_ptr.vmem [resolvable:$true] %s132_s14 }
  0x26   : > { %s122_s19 = scalar_lea.sflag [#allocation3], %s121_s30  ;;  %s368_s21 = scalar_lea.hbm %s580_s7, 32 }
  0x27   : > { %p369_p12 = scmp.ne.s32.totalorder %s580_s7, %s368_s21  ;;  %p370_p13 = pneg %p582_p11 }
  0x28   : > { %s373_s24 = scalar_lea.hbm %s650_s0, 64  ;;  %p374_p10 = scmp.lt.s32.totalorder %s580_s7, %s650_s0 }
  0x29   : > { %p371_p5 = pnand %p370_p13, %p369_p12  ;;  %p375_p1 = scmp.lt.s32.totalorder %s373_s24, %s368_s21 }
  0x2b   : > { %p372_p7 = pneg %p371_p5  ;;  %p376_p2 = por %p375_p1, %p374_p10 }
  0x2d   : > { %p377_p0 = pnand %p376_p2, %p372_p7 }
  0x2f   : > { %380 = shalt.err (!%p377_p0)
}
  0x30   : > { %s381_s27 = scalar_lea.vmem %s133_s14, 32  ;;  %s467_s30 = smov [#allocation2]  }
  0x31   : > { %p382_p3 = scmp.ne.s32.totalorder %s133_s14, %s381_s27  ;;  %s386_s3 = sshll.u32 %s467_s30, 4  ;;  %s387_s3 = int_to_ptr.vmem [resolvable:$false] %s386_s3 }
  0x32   : > { %s388_s4 = scalar_lea.vmem %s387_s3, 64  ;;  %p389_p12 = scmp.lt.s32.totalorder %s133_s14, %s387_s3 }
  0x33   : > { %p384_p6 = pnand %p382_p3, %p370_p13  ;;  %p390_p5 = scmp.lt.s32.totalorder %s388_s4, %s381_s27 }
  0x35   : > { %p385_p9 = pneg %p384_p6  ;;  %p391_p4 = por %p390_p5, %p389_p12 }
  0x37   : > { %p392_p8 = pnand %p391_p4, %p385_p9 }
  0x39   : > { %395 = shalt.err (!%p392_p8)
}
  0x3a   : > { %300 = dma.hbm_to_vmem [thread:$0]  (!%p582_p11), %s580_s7, 32, %s133_s14, %s122_s19  }
  0x3b   : > { %p665_p7 = scmp.ne.s32.totalorder %s659_s17, 0 }
  0x3c   : > { %s603_s5 = sand.u32 (!%p665_p7), 1, %s456_s10   ;;  %p666_p6 = scmp.ne.s32.totalorder (!%p665_p7), %s657_s15, 0 }
  0x3d   : > { %141 = sbr.rel (%p665_p7) target bundleno = 95 (0x5f), region = 28  ;;  %s278_s6 = sshll.u32 (!%p665_p7), %s603_s5, 1 }
  0x3e   : > { %s144_s8 = scalar_lea.sflag (!%p665_p7), [#allocation3], %s603_s5  ;;  %s147_s21 = scalar_lea.vmem (!%p665_p7), [#allocation2], %s278_s6 }
  0x42   : > { %439 = dma.done.wait (%p666_p6), %s144_s8, 32  }
  0x43   : > { %441 = vsyncadd (%p666_p6), %s144_s8, 4294967264  ;;  %p667_p4 = scmp.eq.s32.totalorder %s505_s13, 0 }
  0x45   : > { %443 = dma.done.wait (%p667_p4), [#allocation6], 32   ;;  %p668_p8 = pmov %p667_p4 }
  0x46   : > { %v172_v0 = vld [vmem:[%s147_s21] sm:$0x3]  ;;  %v174_v1 = vld [vmem:[#allocation5] sm:$0x3]  ;;  %s171_s17 = scalar_lea.vmem [#allocation7], %s278_s6  ;;  %s282_s14 = sshll.u32 %s505_s13, 5 }
  0x47   : > { %445 = vsyncadd (%p668_p8), [#allocation6], 4294967264  ;;  %s191_s7 = sshll.u32 %s171_s17, 4  ;;  %v173_v2 = vmul.f32 5.656854, %v172_v0  ;;  %s189_s19 = scalar_lea.hbm %s652_s2, %s282_s14  ;;  %s192_s7 = int_to_ptr.vmem [resolvable:$true] %s191_s7 }
  0x48   : > { %s178_s22 = scalar_lea.sflag [#allocation4], %s603_s5  ;;  %s396_s23 = scalar_lea.vmem %s192_s7, 32 }
  0x49   : > { %v175_v3 = vadd.f32 %v174_v1, %v173_v2  ;;  %p397_p9 = scmp.ne.s32.totalorder %s192_s7, %s396_s23  ;;  %p669_p11 = scmp.ne.s32.totalorder %s663_s29, 0 }
  0x4a   : > { %s468_s24 = smov [#allocation7]  }
  0x4b   : > { %176 = vst [vmem:[%s171_s17] sm:$0x3] %v175_v3  ;;  %p398_p13 = pnand %p397_p9, %p669_p11  ;;  %s400_s25 = sshll.u32 %s468_s24, 4  ;;  %s401_s25 = int_to_ptr.vmem [resolvable:$false] %s400_s25 }
  0x4c   : > { %s402_s26 = scalar_lea.vmem %s401_s25, 64  ;;  %p403_p1 = scmp.lt.s32.totalorder %s192_s7, %s401_s25 }
  0x4d   : > { %p399_p10 = pneg %p398_p13  ;;  %p404_p2 = scmp.lt.s32.totalorder %s402_s26, %s396_s23 }
  0x4f   : > { %p405_p0 = por %p404_p2, %p403_p1 }
  0x51   : > { %p406_p3 = pnand %p405_p0, %p399_p10 }
  0x53   : > { %409 = shalt.err (!%p406_p3)
}
  0x54   : > { %s410_s13 = scalar_lea.hbm %s189_s19, 32  ;;  %s414_s3 = scalar_lea.hbm %s652_s2, 64 }
  0x55   : > { %p411_p12 = scmp.ne.s32.totalorder %s189_s19, %s410_s13  ;;  %p415_p6 = scmp.lt.s32.totalorder %s189_s19, %s652_s2 }
  0x56   : > { %p416_p4 = scmp.lt.s32.totalorder %s414_s3, %s410_s13 }
  0x57   : > { %p412_p5 = pnand %p411_p12, %p669_p11 }
  0x58   : > { %p417_p8 = por %p416_p4, %p415_p6 }
  0x59   : > { %p413_p7 = pneg %p412_p5 }
  0x5b   : > { %p418_p9 = pnand %p417_p8, %p413_p7 }
  0x5d   : > { %421 = shalt.err (!%p418_p9)
}
  0x5e   : > { %291 = dma.vmem_to_hbm [thread:$0]  (%p669_p11), %s192_s7, 32, %s189_s19, %s178_s22  }
  0x5f PF: > { %s203_s6 = sand.u32 1, %s452_s9   ;;  %p670_p13 = scmp.ne.s32.totalorder %s658_s16, 0 }
  0x60   : > { %p671_p10 = scmp.ge.s32.totalorder %s464_s12, 2  ;;  %s204_s8 = scalar_lea.sflag [#allocation4], %s203_s6 }
  0x62   : > { %p302_p1 = pnand %p671_p10, %p670_p13 }
  0x64   : > { %p303_p2 = pneg %p302_p1 }
  0x66   : > { %447 = dma.done.wait (%p303_p2), %s204_s8, 32  }
  0x67   : > { %449 = vsyncadd (%p303_p2), %s204_s8, 4294967264  ;;  %p16_p0 = scmp.ge.s32.totalorder %s532_s20, 4   ;;  %s672_s9 = smov %s456_s10 }
  0x68   : > { %s673_s10 = smov %s460_s11  ;;  %s674_s11 = smov %s559_s28 }
  0x69   : > { %s675_s12 = smov %s532_s20  ;;  %18 = sbr.rel (!%p16_p0) target bundleno = 6 (0x6), region = 77 }
  0x6e   :  { %209 = vsyncpa [#allocation3], 1 }
  0x6f   :  { %211 = vsyncpa [#allocation3 + $0x1], 1 }
  0x70   :  { %212 = vsyncpa [#allocation6], 1 }
  0x71   :  { %213 = vsyncpa [#allocation4], 1 }
  0x72   :  { %215 = vsyncpa [#allocation4 + $0x1], 1 }

</bundles_post_ra>
